<compile_context>
chip_gen: v7x
topology: tpu7x:2x2x1
jax: 0.10.0
libtpu: 0.0.40
codegen_flags: <defaults>
</compile_context>

<pallas_src>
import functools
import math

import jax
import jax.numpy as jnp
from jax.experimental import pallas as pl
from jax.experimental.pallas import tpu as pltpu

_LANES = 128
_INT32_MAX = 0x7FFFFFFF


def _min_sublanes(dtype) -> int:
    """Dtype-dependent dense sublane tile: 8 for 32-bit, 16 for 16-bit, 32 for 8-bit."""
    return {4: 8, 2: 16, 1: 32}.get(jnp.dtype(dtype).itemsize, 8)


def _argmax_reduce_kernel(x_ref, o_ref, *, sub_rows, unroll_c):
    """x_ref: (C, TR, 128) input block; o_ref: (TR, 128) int32 argmax over axis 0."""
    C, TR, L = x_ref.shape
    is_float = jnp.issubdtype(x_ref.dtype, jnp.floating)

    def order_key(v):
        # Monotonic int32 ordering key, computed once per loaded slab.
        if is_float:
            vf = v.astype(jnp.float32)
            vi = jax.lax.bitcast_convert_type(vf, jnp.int32)
            # IEEE total-order transform: flips magnitude bits for negatives.
            k = vi ^ ((vi >> 31) & jnp.int32(_INT32_MAX))
            # +0.0 and -0.0 compare equal (first index wins on ties).
            k = jnp.where(vf == 0.0, jnp.int32(0), k)
            # Any NaN (either sign) sorts as the maximum, matching torch.argmax.
            return jnp.where(vf != vf, jnp.int32(_INT32_MAX), k)
        # TODO(synk): unsigned 32/64-bit integers would need their own key transform.
        return v.astype(jnp.int32)

    def reduce_rows(r0, nrows):
        rows = pl.ds(r0, nrows)
        rm = order_key(x_ref[0, rows, :])          # running max key, (nrows, L)
        ra = jnp.zeros((nrows, L), jnp.int32)      # running argmax

        def step(c, carry):
            rm, ra = carry
            k = order_key(x_ref[c, rows, :])
            take = k > rm                          # strict '>' -> first index wins
            return jnp.where(take, k, rm), jnp.where(take, c, ra)

        if C <= 16:
            # Fully unrolled at trace time for small channel counts.
            carry = (rm, ra)
            for c in range(1, C):
                carry = step(c, carry)
            ra = carry[1]
        else:
            _, ra = jax.lax.fori_loop(1, C, step, (rm, ra), unroll=unroll_c)
        o_ref[rows, :] = ra

    n_sub, rem = divmod(TR, sub_rows)
    if n_sub > 0:
        @pl.loop(0, n_sub)
        def _(r):
            reduce_rows(pl.multiple_of(r * sub_rows, sub_rows), sub_rows)
    if rem > 0:
        # Only reached when TR itself is smaller than one dense sub-tile
        # (TR then equals the full rows dimension of the array).
        reduce_rows(n_sub * sub_rows, rem)


def _pick_block_rows(C, rows_total, itemsize, sub_rows, target_bytes):
    """Rows (of 128 lanes) per input block: multiple of sub_rows when possible,
    input block bytes ~<= target_bytes (unless C alone forces a bigger block)."""
    row_bytes = C * _LANES * itemsize
    rows = max(sub_rows, (target_bytes // row_bytes) // sub_rows * sub_rows)
    rows = min(rows, rows_total)
    if rows > sub_rows:
        rows = (rows // sub_rows) * sub_rows
    return max(1, rows)


def _argmax_over_axis1_3d(x3):
    """argmax over axis 1 of a (B, C, R) array -> (B, R) int32."""
    B, C, R = x3.shape
    itemsize = jnp.dtype(x3.dtype).itemsize
    sub_rows = _min_sublanes(x3.dtype)

    R_pad = ((R + _LANES - 1) // _LANES) * _LANES
    if R_pad != R:
        # TODO(synk): this pads (copies) the input when R % 128 != 0; a ragged
        # lane BlockSpec would avoid the copy. Padded lanes compute garbage
        # indices that are sliced away below.
        x3 = jnp.pad(x3, ((0, 0), (0, 0), (0, R_pad - R)))
    rows_total = R_pad // _LANES
    x4 = x3.reshape(B, C, rows_total, _LANES)

    # ~4 MiB input blocks: big enough to amortize per-grid-step overhead,
    # small enough that double-buffering fits v5e's 16 MiB scoped default.
    TR = _pick_block_rows(C, rows_total, itemsize, sub_rows,
                          target_bytes=4 * 1024 * 1024)
    # TODO(synk): for extremely large C (C * sub_rows * 512B > VMEM budget) the
    # C axis should be tiled across a trailing "arbitrary" grid axis with a
    # resident output block; not needed for the shapes exercised here.

    grid = (B, pl.cdiv(rows_total, TR))

    in_block_bytes = C * TR * _LANES * itemsize
    out_block_bytes = TR * _LANES * 4
    vmem_limit = int(min(max(2 * (in_block_bytes + out_block_bytes) + (2 << 20),
                             16 << 20), 48 << 20))

    cost = pl.CostEstimate(
        flops=B * C * rows_total * _LANES,      # one compare/select pass
        transcendentals=0,
        bytes_accessed=B * C * R_pad * itemsize + B * R_pad * 4,
    )

    kernel = functools.partial(_argmax_reduce_kernel,
                               sub_rows=sub_rows, unroll_c=4)

    # Ragged tail blocks along the rows axis compute argmax over Pallas-padded
    # garbage rows; those results are masked on writeback (benign by design).
    out4 = pl.pallas_call(
        kernel,
        out_shape=jax.ShapeDtypeStruct((B, rows_total, _LANES), jnp.int32),
        grid=grid,
        in_specs=[pl.BlockSpec((None, C, TR, _LANES), lambda b, s: (b, 0, s, 0))],
        out_specs=pl.BlockSpec((None, TR, _LANES), lambda b, s: (b, s, 0)),
        compiler_params=pltpu.CompilerParams(
            dimension_semantics=("parallel", "parallel"),
            vmem_limit_bytes=vmem_limit,
        ),
        cost_estimate=cost,
    )(x4)

    out = out4.reshape(B, R_pad)
    if R_pad != R:
        out = out[:, :R]
    return out


@functools.partial(jax.jit, static_argnames="dim")
def argmax_pallas(x: jax.Array, dim: int = 1) -> jax.Array:
    """torch.argmax(x, dim) equivalent; returns int32 indices with `dim` removed."""
    dim = dim % x.ndim
    lead = math.prod(x.shape[:dim]) if dim > 0 else 1
    trail = math.prod(x.shape[dim + 1:]) if dim + 1 < x.ndim else 1
    C = x.shape[dim]
    x3 = x.reshape(lead, C, trail)          # free reshape, no transpose needed
    out = _argmax_over_axis1_3d(x3)
    return out.reshape(x.shape[:dim] + x.shape[dim + 1:])


if __name__ == "__main__":
    key = jax.random.PRNGKey(0)
    B, C, H, W = 2, 4, 16, 16               # small NCHW example; argmax over dim=1
    x = jax.random.normal(key, (B, C, H, W), dtype=jnp.float32)

    y = argmax_pallas(x, dim=1)
    jax.block_until_ready(y)

    # sanity check against plain JAX reference
    ref = jnp.argmax(x, axis=1).astype(jnp.int32)
    assert y.shape == ref.shape, (y.shape, ref.shape)
    assert y.dtype == jnp.int32
    assert bool(jnp.all(y == ref))

    print("KERNEL_OK")
</pallas_src>

<mosaic_0001>
module attributes {stable_mosaic.version = 11 : i64} {
  func.func @_argmax_reduce_kernel(%arg0: i32, %arg1: i32, %arg2: memref<1x4x2x128xf32, #tpu.memory_space<vmem>>, %arg3: memref<1x2x128xi32, #tpu.memory_space<vmem>>) attributes {dimension_semantics = [#tpu.dimension_semantics<parallel>, #tpu.dimension_semantics<parallel>], iteration_bounds = array<i64: 2, 1>, scalar_prefetch = 0 : i64, scratch_operands = 0 : i64, tpu.core_type = #tpu.core_type<tc>, window_params = [{transform_indices = @transform_0, window_bounds = array<i64: 1, 4, 2, 128>}, {transform_indices = @transform_1, window_bounds = array<i64: 1, 2, 128>}]} {
    %c0 = arith.constant 0 : index
    %c0_0 = arith.constant 0 : index
    %c0_1 = arith.constant 0 : index
    %c0_2 = arith.constant 0 : index
    %0 = vector.load %arg2[%c0, %c0_0, %c0_1, %c0_2] : memref<1x4x2x128xf32, #tpu.memory_space<vmem>>, vector<1x1x2x128xf32>
    %1 = vector.shape_cast %0 : vector<1x1x2x128xf32> to vector<2x128xf32>
    %2 = tpu.bitcast %1 : vector<2x128xf32> -> vector<2x128xi32>
    %c31_i32 = arith.constant 31 : i32
    %3 = vector.broadcast %c31_i32 : i32 to vector<2x128xi32>
    %4 = arith.shrsi %2, %3 : vector<2x128xi32>
    %c2147483647_i32 = arith.constant 2147483647 : i32
    %5 = vector.broadcast %c2147483647_i32 : i32 to vector<2x128xi32>
    %6 = arith.andi %4, %5 : vector<2x128xi32>
    %7 = arith.xori %2, %6 : vector<2x128xi32>
    %cst = arith.constant 0.000000e+00 : f32
    %8 = vector.broadcast %cst : f32 to vector<2x128xf32>
    %9 = arith.cmpf oeq, %1, %8 : vector<2x128xf32>
    %c0_i32 = arith.constant 0 : i32
    %10 = vector.broadcast %c0_i32 : i32 to vector<2x128xi32>
    %11 = arith.select %9, %10, %7 : vector<2x128xi1>, vector<2x128xi32>
    %12 = arith.cmpf one, %1, %1 : vector<2x128xf32>
    %c2147483647_i32_3 = arith.constant 2147483647 : i32
    %13 = vector.broadcast %c2147483647_i32_3 : i32 to vector<2x128xi32>
    %14 = arith.select %12, %13, %11 : vector<2x128xi1>, vector<2x128xi32>
    %c0_i32_4 = arith.constant 0 : i32
    %15 = vector.broadcast %c0_i32_4 : i32 to vector<2x128xi32>
    %c0_5 = arith.constant 0 : index
    %c1 = arith.constant 1 : index
    %c0_6 = arith.constant 0 : index
    %c0_7 = arith.constant 0 : index
    %16 = vector.load %arg2[%c0_5, %c1, %c0_6, %c0_7] : memref<1x4x2x128xf32, #tpu.memory_space<vmem>>, vector<1x1x2x128xf32>
    %17 = vector.shape_cast %16 : vector<1x1x2x128xf32> to vector<2x128xf32>
    %18 = tpu.bitcast %17 : vector<2x128xf32> -> vector<2x128xi32>
    %c31_i32_8 = arith.constant 31 : i32
    %19 = vector.broadcast %c31_i32_8 : i32 to vector<2x128xi32>
    %20 = arith.shrsi %18, %19 : vector<2x128xi32>
    %c2147483647_i32_9 = arith.constant 2147483647 : i32
    %21 = vector.broadcast %c2147483647_i32_9 : i32 to vector<2x128xi32>
    %22 = arith.andi %20, %21 : vector<2x128xi32>
    %23 = arith.xori %18, %22 : vector<2x128xi32>
    %cst_10 = arith.constant 0.000000e+00 : f32
    %24 = vector.broadcast %cst_10 : f32 to vector<2x128xf32>
    %25 = arith.cmpf oeq, %17, %24 : vector<2x128xf32>
    %c0_i32_11 = arith.constant 0 : i32
    %26 = vector.broadcast %c0_i32_11 : i32 to vector<2x128xi32>
    %27 = arith.select %25, %26, %23 : vector<2x128xi1>, vector<2x128xi32>
    %28 = arith.cmpf one, %17, %17 : vector<2x128xf32>
    %c2147483647_i32_12 = arith.constant 2147483647 : i32
    %29 = vector.broadcast %c2147483647_i32_12 : i32 to vector<2x128xi32>
    %30 = arith.select %28, %29, %27 : vector<2x128xi1>, vector<2x128xi32>
    %31 = arith.cmpi sgt, %30, %14 : vector<2x128xi32>
    %32 = arith.select %31, %30, %14 : vector<2x128xi1>, vector<2x128xi32>
    %c1_i32 = arith.constant 1 : i32
    %33 = vector.broadcast %c1_i32 : i32 to vector<2x128xi32>
    %34 = arith.select %31, %33, %15 : vector<2x128xi1>, vector<2x128xi32>
    %c0_13 = arith.constant 0 : index
    %c2 = arith.constant 2 : index
    %c0_14 = arith.constant 0 : index
    %c0_15 = arith.constant 0 : index
    %35 = vector.load %arg2[%c0_13, %c2, %c0_14, %c0_15] : memref<1x4x2x128xf32, #tpu.memory_space<vmem>>, vector<1x1x2x128xf32>
    %36 = vector.shape_cast %35 : vector<1x1x2x128xf32> to vector<2x128xf32>
    %37 = tpu.bitcast %36 : vector<2x128xf32> -> vector<2x128xi32>
    %c31_i32_16 = arith.constant 31 : i32
    %38 = vector.broadcast %c31_i32_16 : i32 to vector<2x128xi32>
    %39 = arith.shrsi %37, %38 : vector<2x128xi32>
    %c2147483647_i32_17 = arith.constant 2147483647 : i32
    %40 = vector.broadcast %c2147483647_i32_17 : i32 to vector<2x128xi32>
    %41 = arith.andi %39, %40 : vector<2x128xi32>
    %42 = arith.xori %37, %41 : vector<2x128xi32>
    %cst_18 = arith.constant 0.000000e+00 : f32
    %43 = vector.broadcast %cst_18 : f32 to vector<2x128xf32>
    %44 = arith.cmpf oeq, %36, %43 : vector<2x128xf32>
    %c0_i32_19 = arith.constant 0 : i32
    %45 = vector.broadcast %c0_i32_19 : i32 to vector<2x128xi32>
    %46 = arith.select %44, %45, %42 : vector<2x128xi1>, vector<2x128xi32>
    %47 = arith.cmpf one, %36, %36 : vector<2x128xf32>
    %c2147483647_i32_20 = arith.constant 2147483647 : i32
    %48 = vector.broadcast %c2147483647_i32_20 : i32 to vector<2x128xi32>
    %49 = arith.select %47, %48, %46 : vector<2x128xi1>, vector<2x128xi32>
    %50 = arith.cmpi sgt, %49, %32 : vector<2x128xi32>
    %51 = arith.select %50, %49, %32 : vector<2x128xi1>, vector<2x128xi32>
    %c2_i32 = arith.constant 2 : i32
    %52 = vector.broadcast %c2_i32 : i32 to vector<2x128xi32>
    %53 = arith.select %50, %52, %34 : vector<2x128xi1>, vector<2x128xi32>
    %c0_21 = arith.constant 0 : index
    %c3 = arith.constant 3 : index
    %c0_22 = arith.constant 0 : index
    %c0_23 = arith.constant 0 : index
    %54 = vector.load %arg2[%c0_21, %c3, %c0_22, %c0_23] : memref<1x4x2x128xf32, #tpu.memory_space<vmem>>, vector<1x1x2x128xf32>
    %55 = vector.shape_cast %54 : vector<1x1x2x128xf32> to vector<2x128xf32>
    %56 = tpu.bitcast %55 : vector<2x128xf32> -> vector<2x128xi32>
    %c31_i32_24 = arith.constant 31 : i32
    %57 = vector.broadcast %c31_i32_24 : i32 to vector<2x128xi32>
    %58 = arith.shrsi %56, %57 : vector<2x128xi32>
    %c2147483647_i32_25 = arith.constant 2147483647 : i32
    %59 = vector.broadcast %c2147483647_i32_25 : i32 to vector<2x128xi32>
    %60 = arith.andi %58, %59 : vector<2x128xi32>
    %61 = arith.xori %56, %60 : vector<2x128xi32>
    %cst_26 = arith.constant 0.000000e+00 : f32
    %62 = vector.broadcast %cst_26 : f32 to vector<2x128xf32>
    %63 = arith.cmpf oeq, %55, %62 : vector<2x128xf32>
    %c0_i32_27 = arith.constant 0 : i32
    %64 = vector.broadcast %c0_i32_27 : i32 to vector<2x128xi32>
    %65 = arith.select %63, %64, %61 : vector<2x128xi1>, vector<2x128xi32>
    %66 = arith.cmpf one, %55, %55 : vector<2x128xf32>
    %c2147483647_i32_28 = arith.constant 2147483647 : i32
    %67 = vector.broadcast %c2147483647_i32_28 : i32 to vector<2x128xi32>
    %68 = arith.select %66, %67, %65 : vector<2x128xi1>, vector<2x128xi32>
    %69 = arith.cmpi sgt, %68, %51 : vector<2x128xi32>
    %c3_i32 = arith.constant 3 : i32
    %70 = vector.broadcast %c3_i32 : i32 to vector<2x128xi32>
    %71 = arith.select %69, %70, %53 : vector<2x128xi1>, vector<2x128xi32>
    %c0_29 = arith.constant 0 : index
    %c0_30 = arith.constant 0 : index
    %c0_31 = arith.constant 0 : index
    %72 = vector.load %arg3[%c0_29, %c0_30, %c0_31] : memref<1x2x128xi32, #tpu.memory_space<vmem>>, vector<1x2x128xi32>
    %73 = vector.shape_cast %72 : vector<1x2x128xi32> to vector<2x128xi32>
    %74 = vector.shape_cast %71 : vector<2x128xi32> to vector<1x2x128xi32>
    tpu.vector_store %arg3[%c0_29, %c0_30, %c0_31], %74 {strides = array<i32>} : memref<1x2x128xi32, #tpu.memory_space<vmem>>, vector<1x2x128xi32>,
    return
  }
  func.func @transform_0(%arg0: i32, %arg1: i32) -> (i32, i32, i32, i32) {
    %c0_i32 = arith.constant 0 : i32
    %c0_i32_0 = arith.constant 0 : i32
    %c0_i32_1 = arith.constant 0 : i32
    return %arg0, %c0_i32, %arg1, %c0_i32_0 : i32, i32, i32, i32
  }
  func.func @transform_1(%arg0: i32, %arg1: i32) -> (i32, i32, i32) {
    %c0_i32 = arith.constant 0 : i32
    %c0_i32_0 = arith.constant 0 : i32
    return %arg0, %arg1, %c0_i32 : i32, i32, i32
  }
}

</mosaic_0001>

<bundles_post_ra>
// kernel: argmax_pallas.1
= control target key start
LH: loop header
LB: loop body
LE: loop exit
PB: predicated region body
PF: predicated region fallthrough
CT: control target
= control target key end

     0   :  { %s345_s6 = smov 0   ;;  %s347_s7 = smov 0   ;;  %s382_s0 = inlined_call_operand.vmem [shape: f32[2,4,2,128], index: 0, kind: input, shape index: {}]   ;;  %s383_s1 = inlined_call_operand.vmem [shape: s32[2,2,128], index: 1, kind: output, shape index: {}]  }
   0x1   :  { %s349_s8 = smov 0  }
   0x2 LB: > { %s23_s9 = sadd.s32 1, %s328_s7  ;;  %p275_p0 = scmp.ge.s32.totalorder %s332_s8, 1  ;;  %s332_s8 = sphi %s349_s8, %s11_s8   ;;  %s328_s7 = sphi %s347_s7, %s385_s7   ;;  %s324_s6 = sphi %s345_s6, %s384_s6  }
   0x3   : > { %p25_p1 = scmp.ge.s32.totalorder %s23_s9, 2  ;;  %p106_p2 = scmp.lt.s32.totalorder %s332_s8, 3 }
   0x5   : > { %s387_s9 = smov (%p25_p1, %s23_s9), 0  ;;  %p107_p3 = pnand %p275_p0, %p106_p2 }
   0x6   : > { %p131_p4 = scmp.lt.s32.totalorder (!%p107_p3), %s324_s6, 1  ;;  %v334_v24 = vmov (!%p107_p3), 0  }
   0x7   : > { %110 = sbr.rel (%p107_p3) target bundleno = 33 (0x21), region = 24 }
   0xe   : > { %s389_s6 = smov (!%p131_p4, %s324_s6), 1 }
   0xf   : > { %s284_s10 = sshll.u32 %s389_s6, 3  ;;  %s278_s14 = sshll.u32 %s389_s6, 1 }
  0x10   : > { %s138_s13 = scalar_lea.vmem %s382_s0, %s284_s10  ;;  %s145_s17 = scalar_lea.vmem %s383_s1, %s278_s14 }
  0x11   : > { %v146_v0 = vld [vmem:[%s138_s13] sm:$0x3]  ;;  %v279_v1 = vld [vmem:[%s138_s13 + $0x2] sm:$0x3]  ;;  %v280_v2 = vld [vmem:[%s138_s13 + $0x4] sm:$0x3] }
  0x12   : > { %v148_v3 = vshra.s32 %v146_v0, 31  ;;  %v158_v4 = vshra.s32 %v279_v1, 31  ;;  %v281_v5 = vld [vmem:[%s138_s13 + $0x6] sm:$0x3]  ;;  %v171_v6 = vshra.s32 %v280_v2, 31  ;;  %vm151_vm0 = vcmp.eq.f32.partialorder %v146_v0, 0.0 }
  0x13   : > { %v184_v9 = vshra.s32 %v281_v5, 31  ;;  %vm153_vm1 = vcmp.ne.f32.partialorder %v146_v0, %v146_v0  ;;  %vm161_vm2 = vcmp.eq.f32.partialorder %v279_v1, 0.0  ;;  %vm163_vm3 = vcmp.ne.f32.partialorder %v279_v1, %v279_v1 }
  0x14   : > { %v149_v7 = vand.u32 2147483647, %v148_v3  ;;  %v159_v8 = vand.u32 2147483647, %v158_v4  ;;  %v172_v10 = vand.u32 2147483647, %v171_v6  ;;  %vm176_vm5 = vcmp.ne.f32.partialorder %v280_v2, %v280_v2 }
  0x15   : > { %vm174_vm4 = vcmp.eq.f32.partialorder %v280_v2, 0.0  ;;  %v185_v13 = vand.u32 2147483647, %v184_v9  ;;  %vm187_vm6 = vcmp.eq.f32.partialorder %v281_v5, 0.0  ;;  %vm189_vm7 = vcmp.ne.f32.partialorder %v281_v5, %v281_v5 }
  0x16   : > { %v150_v11 = vxor.u32 %v149_v7, %v146_v0  ;;  %v160_v12 = vxor.u32 %v279_v1, %v159_v8  ;;  %v173_v14 = vxor.u32 %v280_v2, %v172_v10 }
  0x17   : > { %v186_v17 = vxor.u32 %v281_v5, %v185_v13 }
  0x18   : > { %v152_v15 = vsel %vm151_vm0, 0, %v150_v11  ;;  %v162_v16 = vsel %vm161_vm2, 0, %v160_v12  ;;  %v175_v20 = vsel %vm174_vm4, 0, %v173_v14 }
  0x19   : > { %v154_v18 = vsel %vm153_vm1, 2147483647, %v152_v15  ;;  %v164_v19 = vsel %vm163_vm3, 2147483647, %v162_v16  ;;  %v177_v21 = vsel %vm176_vm5, 2147483647, %v175_v20 }
  0x1a   : > { %vm165_vm8 = vcmp.gt.s32.totalorder %v164_v19, %v154_v18  ;;  %v188_v22 = vsel %vm187_vm6, 0, %v186_v17 }
  0x1b   : > { %v166_v23 = vsel %vm165_vm8, %v164_v19, %v154_v18  ;;  %v167_v25 = vsel %vm165_vm8, 1, %v334_v24  ;;  %v190_v26 = vsel %vm189_vm7, 2147483647, %v188_v22 }
  0x1c   : > { %vm178_vm9 = vcmp.gt.s32.totalorder %v177_v21, %v166_v23 }
  0x1d   : > { %v179_v27 = vsel %vm178_vm9, %v177_v21, %v166_v23  ;;  %v180_v28 = vsel %vm178_vm9, 2, %v167_v25 }
  0x1e   : > { %vm191_vm10 = vcmp.gt.s32.totalorder %v190_v26, %v179_v27 }
  0x1f   : > { %v192_v29 = vsel %vm191_vm10, 3, %v180_v28 }
  0x20   : > { %193 = vst [vmem:[%s145_s17] sm:$0x3] %v192_v29 }
  0x21 PF: > { %s11_s8 = sadd.s32 1, %s332_s8   ;;  %s384_s6 = smov %s328_s7 }
  0x22   : > { %p8_p5 = scmp.ge.s32.totalorder %s11_s8, 4   ;;  %s385_s7 = smov %s387_s9 }
  0x24   :  { %10 = sbr.rel (!%p8_p5) target bundleno = 2 (0x2), region = 57 }

</bundles_post_ra>
